<compile_context>
chip_gen: v6e
topology: v6e:2x2x1
jax: 0.10.0
libtpu: 0.0.40
codegen_flags: <defaults>
</compile_context>

<pallas_src>
import jax
import jax.numpy as jnp
from jax.experimental import pallas as pl
from jax.experimental.pallas import tpu as pltpu


def planar_flow_kernel(b_ref, wu_ref, w_ref, u_ref, z_ref, znext_ref, ldj_ref):
    z = z_ref[...]                 # (TB, D) float32, batch tile
    w = w_ref[...]                 # (1, D)  resident parameter
    u = u_ref[...]                 # (1, D)  resident parameter
    b = b_ref[0, 0]                # scalar (SMEM)
    wu = wu_ref[0, 0]              # scalar (SMEM): sum(w * u), precomputed

    # affine = z @ w.T + b  -> (TB, 1); broadcast-mul (VPU) + lane reduce (XLU).
    affine = jnp.sum(z * w, axis=-1, keepdims=True) + b

    t = jnp.tanh(affine)                       # (TB, 1)  EUP
    znext_ref[...] = u * t + z                 # (1,D)*(TB,1) + (TB,D)

    # psi @ u.T == (1 - tanh^2) * (w @ u.T) == h_prime * wu  (psi eliminated)
    h_prime = 1.0 - t * t                      # (TB, 1)
    ldj_ref[...] = -jnp.log(jnp.abs(h_prime * wu + 1.0) + 1e-8)


def planar_flow(z, w, b, u, *, block_b=2048):
    """Planar flow forward. Returns (z_next (B, D), LDJ (B, 1))."""
    B, D = z.shape

    # Batch tile: full batch if it fits, otherwise a multiple of 8 (sublane)
    # so the (8, 128) BlockSpec divisibility rule is always satisfied.
    if block_b >= B:
        TB = B
    else:
        TB = max(8, (min(block_b, B) // 8) * 8)
    grid = (pl.cdiv(B, TB),)

    # Precompute the scalar w @ u.T once on the XLA side.
    wu = jnp.sum(w * u).reshape(1, 1).astype(z.dtype)
    b2 = jnp.reshape(b, (1, 1)).astype(z.dtype)

    smem_scalar = pl.BlockSpec(memory_space=pltpu.MemorySpace.SMEM)

    out_shapes = (
        jax.ShapeDtypeStruct((B, D), z.dtype),   # z_next
        jax.ShapeDtypeStruct((B, 1), z.dtype),   # LDJ
    )
    return pl.pallas_call(
        planar_flow_kernel,
        out_shape=out_shapes,
        grid=grid,
        in_specs=[
            smem_scalar,                                # b   (SMEM scalar)
            smem_scalar,                                # wu  (SMEM scalar)
            pl.BlockSpec((1, D), lambda i: (0, 0)),     # w   (VMEM, resident)
            pl.BlockSpec((1, D), lambda i: (0, 0)),     # u   (VMEM, resident)
            pl.BlockSpec((TB, D), lambda i: (i, 0)),    # z   (batch tile)
        ],
        out_specs=(
            pl.BlockSpec((TB, D), lambda i: (i, 0)),    # z_next
            pl.BlockSpec((TB, 1), lambda i: (i, 0)),    # LDJ
        ),
        compiler_params=pltpu.CompilerParams(
            dimension_semantics=("parallel",),
        ),
    )(b2, wu, w, u, z)


def reference_planar_flow(z, w, b, u):
    affine = z @ w.T + b
    z_next = u * jnp.tanh(affine) + z
    psi = (1.0 - jnp.tanh(affine) ** 2) * w
    ldj = -jnp.log(jnp.abs(psi @ u.T + 1.0) + 1e-8)
    return z_next, ldj


if __name__ == "__main__":
    key = jax.random.PRNGKey(0)
    k_z, k_w, k_b, k_u, k_z2 = jax.random.split(key, 5)

    B, D = 8, 32  # small batch, latent dimensionality

    # Deterministic parameter init matching nn.Parameter(torch.randn(...) * 0.01)
    w = jax.random.normal(k_w, (1, D), dtype=jnp.float32) * 0.01
    b = jax.random.normal(k_b, (1, 1), dtype=jnp.float32) * 0.01
    u = jax.random.normal(k_u, (1, D), dtype=jnp.float32) * 0.01

    # --- test 1: single-tile case ---
    z = jax.random.normal(k_z, (B, D), dtype=jnp.float32)
    z_next, ldj = planar_flow(z, w, b, u)
    jax.block_until_ready((z_next, ldj))

    z_next_ref, ldj_ref = reference_planar_flow(z, w, b, u)
    assert jnp.allclose(z_next, z_next_ref, atol=1e-5, rtol=1e-5)
    assert jnp.allclose(ldj, ldj_ref, atol=1e-5, rtol=1e-5)

    # --- test 2: multi-tile grid (exercises the batch pipeline) ---
    B2 = 48
    z2 = jax.random.normal(k_z2, (B2, D), dtype=jnp.float32)
    z_next2, ldj2 = planar_flow(z2, w, b, u, block_b=16)   # grid = (3,)
    jax.block_until_ready((z_next2, ldj2))

    z_next2_ref, ldj2_ref = reference_planar_flow(z2, w, b, u)
    assert jnp.allclose(z_next2, z_next2_ref, atol=1e-5, rtol=1e-5)
    assert jnp.allclose(ldj2, ldj2_ref, atol=1e-5, rtol=1e-5)

    print("KERNEL_OK")
</pallas_src>

<mosaic_0001>
module attributes {stable_mosaic.version = 11 : i64} {
  func.func @planar_flow_kernel(%arg0: i32, %arg1: memref<1x1xf32, #tpu.memory_space<smem>>, %arg2: memref<1x1xf32, #tpu.memory_space<smem>>, %arg3: memref<1x32xf32, #tpu.memory_space<vmem>>, %arg4: memref<1x32xf32, #tpu.memory_space<vmem>>, %arg5: memref<8x32xf32, #tpu.memory_space<vmem>>, %arg6: memref<8x32xf32, #tpu.memory_space<vmem>>, %arg7: memref<8x1xf32, #tpu.memory_space<vmem>>) attributes {dimension_semantics = [#tpu.dimension_semantics<parallel>], iteration_bounds = array<i64: 1>, scalar_prefetch = 0 : i64, scratch_operands = 0 : i64, tpu.core_type = #tpu.core_type<tc>, window_params = [{transform_indices = @transform_0, window_bounds = array<i64: 1, 1>}, {transform_indices = @transform_1, window_bounds = array<i64: 1, 1>}, {pipeline_mode = #tpu.pipeline_mode<synchronous>, transform_indices = @transform_2, window_bounds = array<i64: 1, 32>}, {pipeline_mode = #tpu.pipeline_mode<synchronous>, transform_indices = @transform_3, window_bounds = array<i64: 1, 32>}, {transform_indices = @transform_4, window_bounds = array<i64: 8, 32>}, {transform_indices = @transform_5, window_bounds = array<i64: 8, 32>}, {transform_indices = @transform_6, window_bounds = array<i64: 8, 1>}]} {
    %c0 = arith.constant 0 : index
    %c0_0 = arith.constant 0 : index
    %0 = vector.load %arg5[%c0, %c0_0] : memref<8x32xf32, #tpu.memory_space<vmem>>, vector<8x32xf32>
    %c0_1 = arith.constant 0 : index
    %c0_2 = arith.constant 0 : index
    %1 = vector.load %arg3[%c0_1, %c0_2] : memref<1x32xf32, #tpu.memory_space<vmem>>, vector<1x32xf32>
    %c0_3 = arith.constant 0 : index
    %c0_4 = arith.constant 0 : index
    %2 = vector.load %arg4[%c0_3, %c0_4] : memref<1x32xf32, #tpu.memory_space<vmem>>, vector<1x32xf32>
    %c0_5 = arith.constant 0 : index
    %c0_6 = arith.constant 0 : index
    %3 = memref.load %arg1[%c0_5, %c0_6] : memref<1x1xf32, #tpu.memory_space<smem>>
    %c0_7 = arith.constant 0 : index
    %c0_8 = arith.constant 0 : index
    %4 = memref.load %arg2[%c0_7, %c0_8] : memref<1x1xf32, #tpu.memory_space<smem>>
    %5 = vector.broadcast %1 : vector<1x32xf32> to vector<8x32xf32>
    %6 = arith.mulf %0, %5 : vector<8x32xf32>
    %cst = arith.constant dense<0.000000e+00> : vector<8xf32>
    %7 = vector.multi_reduction <add>, %6, %cst [1] : vector<8x32xf32> to vector<8xf32>
    %8 = vector.shape_cast %7 : vector<8xf32> to vector<8x1xf32>
    %9 = vector.broadcast %3 : f32 to vector<8x1xf32>
    %10 = arith.addf %8, %9 : vector<8x1xf32>
    %11 = math.tanh %10 : vector<8x1xf32>
    %12 = vector.broadcast %2 : vector<1x32xf32> to vector<8x32xf32>
    %13 = vector.broadcast %11 : vector<8x1xf32> to vector<8x32xf32>
    %14 = arith.mulf %12, %13 : vector<8x32xf32>
    %15 = arith.addf %14, %0 : vector<8x32xf32>
    %c0_9 = arith.constant 0 : index
    %c0_10 = arith.constant 0 : index
    %16 = vector.load %arg6[%c0_9, %c0_10] : memref<8x32xf32, #tpu.memory_space<vmem>>, vector<8x32xf32>
    tpu.vector_store %arg6[%c0_9, %c0_10], %15 {strides = array<i32>} : memref<8x32xf32, #tpu.memory_space<vmem>>, vector<8x32xf32>,
    %17 = arith.mulf %11, %11 : vector<8x1xf32>
    %cst_11 = arith.constant 1.000000e+00 : f32
    %18 = vector.broadcast %cst_11 : f32 to vector<8x1xf32>
    %19 = arith.subf %18, %17 : vector<8x1xf32>
    %20 = vector.broadcast %4 : f32 to vector<8x1xf32>
    %21 = arith.mulf %19, %20 : vector<8x1xf32>
    %cst_12 = arith.constant 1.000000e+00 : f32
    %22 = vector.broadcast %cst_12 : f32 to vector<8x1xf32>
    %23 = arith.addf %21, %22 : vector<8x1xf32>
    %24 = math.absf %23 : vector<8x1xf32>
    %cst_13 = arith.constant 9.99999993E-9 : f32
    %25 = vector.broadcast %cst_13 : f32 to vector<8x1xf32>
    %26 = arith.addf %24, %25 : vector<8x1xf32>
    %27 = math.log %26 : vector<8x1xf32>
    %cst_14 = arith.constant 0.000000e+00 : f32
    %28 = vector.broadcast %cst_14 : f32 to vector<8x1xf32>
    %29 = arith.subf %28, %27 : vector<8x1xf32>
    %c0_15 = arith.constant 0 : index
    %c0_16 = arith.constant 0 : index
    %30 = vector.load %arg7[%c0_15, %c0_16] : memref<8x1xf32, #tpu.memory_space<vmem>>, vector<8x1xf32>
    tpu.vector_store %arg7[%c0_15, %c0_16], %29 {strides = array<i32>} : memref<8x1xf32, #tpu.memory_space<vmem>>, vector<8x1xf32>,
    return
  }
  func.func @transform_0(%arg0: i32) -> (i32, i32) {
    %c0_i32 = arith.constant 0 : i32
    %c0_i32_0 = arith.constant 0 : i32
    %c0_i32_1 = arith.constant 0 : i32
    return %c0_i32, %c0_i32_0 : i32, i32
  }
  func.func @transform_1(%arg0: i32) -> (i32, i32) {
    %c0_i32 = arith.constant 0 : i32
    %c0_i32_0 = arith.constant 0 : i32
    %c0_i32_1 = arith.constant 0 : i32
    return %c0_i32, %c0_i32_0 : i32, i32
  }
  func.func @transform_2(%arg0: i32) -> (i32, i32) {
    %c0_i32 = arith.constant 0 : i32
    %c0_i32_0 = arith.constant 0 : i32
    %c0_i32_1 = arith.constant 0 : i32
    return %c0_i32, %c0_i32_0 : i32, i32
  }
  func.func @transform_3(%arg0: i32) -> (i32, i32) {
    %c0_i32 = arith.constant 0 : i32
    %c0_i32_0 = arith.constant 0 : i32
    %c0_i32_1 = arith.constant 0 : i32
    return %c0_i32, %c0_i32_0 : i32, i32
  }
  func.func @transform_4(%arg0: i32) -> (i32, i32) {
    %c0_i32 = arith.constant 0 : i32
    %c0_i32_0 = arith.constant 0 : i32
    return %arg0, %c0_i32 : i32, i32
  }
  func.func @transform_5(%arg0: i32) -> (i32, i32) {
    %c0_i32 = arith.constant 0 : i32
    %c0_i32_0 = arith.constant 0 : i32
    return %arg0, %c0_i32 : i32, i32
  }
  func.func @transform_6(%arg0: i32) -> (i32, i32) {
    %c0_i32 = arith.constant 0 : i32
    %c0_i32_0 = arith.constant 0 : i32
    return %arg0, %c0_i32 : i32, i32
  }
}

</mosaic_0001>

<bundles_post_ra>
// kernel: tpu_custom_call.1
= control target key start
LH: loop header
LB: loop body
LE: loop exit
PB: predicated region body
PF: predicated region fallthrough
CT: control target
= control target key end

     0   :  { %14 = vsyncpa [#allocation5], 0  ;;  %s208_s0 = inlined_call_operand.<no memory space> [shape: f32[1,1], index: 0, kind: input, shape index: {}]   ;;  %s209_s1 = inlined_call_operand.<no memory space> [shape: f32[1,1], index: 1, kind: input, shape index: {}]   ;;  %s210_s2 = inlined_call_operand.vmem [shape: f32[1,32], index: 2, kind: input, shape index: {}]   ;;  %s211_s3 = inlined_call_operand.vmem [shape: f32[1,32], index: 3, kind: input, shape index: {}]   ;;  %s212_s4 = inlined_call_operand.hbm [shape: f32[8,32], index: 4, kind: input, shape index: {}]   ;;  %s213_s5 = inlined_call_operand.hbm [shape: f32[8,32], index: 5, kind: output, shape index: {0}]   ;;  %s214_s6 = inlined_call_operand.vmem [shape: f32[8,1], index: 6, kind: output, shape index: {1}]  }
   0x1   :  { %15 = vsyncpa [#allocation6], 0  ;;  %s148_s21 = smov [#allocation4]  }
   0x2   :  { %s30_s22 = sshll.u32 %s148_s21, 4  ;;  %s31_s22 = int_to_ptr.vmem [resolvable:$true] %s30_s22 }
   0x3   :  { %s112_s23 = scalar_lea.vmem %s31_s22, 128  ;;  %p117_p1 = scmp.lt.s32.totalorder %s31_s22, %s31_s22 }
   0x4   :  { %p113_p0 = scmp.ne.s32.totalorder %s31_s22, %s112_s23  ;;  %p118_p2 = scmp.lt.s32.totalorder %s112_s23, %s112_s23 }
   0x6   :  { %p119_p3 = por %p118_p2, %p117_p1 }
   0x8   :  { %p120_p4 = pnand %p119_p3, %p113_p0 }
   0xa   :  { %123 = shalt.err (!%p120_p4)
}
   0xb   :  { %33 = dma.hbm_to_vmem [thread:$0]  %s212_s4, 128, %s31_s22, [#allocation5]  }
   0xc   :  { %144 = dma.done.wait [#allocation5], 128  }
   0xd   :  { %145 = vsyncadd [#allocation5], 4294967168  ;;  %v37_v0 = vld [vmem:[#allocation4] sm:$0xff]  ;;  %vm49_vm0 = vcmask 261120   ;;  %v53_v4 = vstv %s208_s0  ;;  %s149_s7 = smov [#allocation7]   ;;  %v67_v11 = vstv %s209_s1 }
   0xe   :  { %v96_v1 = vld [vmem:[%s210_s2] ss:$0 sm:$0xff]  ;;  %s83_s8 = sshll.u32 %s149_s7, 4  ;;  %s84_s8 = int_to_ptr.vmem [resolvable:$true] %s83_s8 }
   0xf   :  { %v48_v2 = vmul.f32 %v96_v1, %v37_v0  ;;  %v97_v7 = vld [vmem:[%s211_s3] ss:$0 sm:$0xff]  ;;  %s124_s0 = scalar_lea.vmem %s84_s8, 128  ;;  %p129_p6 = scmp.lt.s32.totalorder %s84_s8, %s84_s8 }
  0x10   :  { %p125_p5 = scmp.ne.s32.totalorder %s84_s8, %s124_s0  ;;  %p130_p7 = scmp.lt.s32.totalorder %s124_s0, %s124_s0 }
  0x11   :  { %v50_v3 = vsel %vm49_vm0, %v48_v2, 0.0 }
  0x12   :  { %51 = vadd.xlane.f32.xlu0 %v50_v3  ;;  %p131_p8 = por %p130_p7, %p129_p6 }
  0x14   :  { %p132_p9 = pnand %p131_p8, %p125_p5 }
  0x9b   :  { %v52_v5 = vpop.xlane.xlu0 %51 }
  0x9c   :  { %v54_v6 = vadd.f32 %v53_v4, %v52_v5 }
  0x9e   :  { %100 = vtanh.f32 %v54_v6 }
  0xab   :  { %v101_v8 = vpop.eup %100 }
  0xac   :  { %v65_v9 = vmul.f32 %v101_v8, %v101_v8  ;;  %v62_v10 = vmul.f32 %v101_v8, %v97_v7 }
  0xae   :  { %v66_v12 = vsub.f32 1.0, %v65_v9  ;;  %v63_v13 = vadd.f32 %v62_v10, %v37_v0 }
  0xb0   :  { %v68_v14 = vmul.f32 %v67_v11, %v66_v12  ;;  %64 = vst.msk [vmem:[#allocation7] sm:$0xff] %vm49_vm0, %v63_v13 }
  0xb1   :  { %135 = shalt.err (!%p132_p9)
}
  0xb2   :  { %86 = dma.vmem_to_hbm [thread:$0]  %s84_s8, 128, %s213_s5, [#allocation6]   ;;  %v69_v15 = vadd.f32 1.0, %v68_v14  ;;  %vm75_vm1 = vcmask 7168  }
  0xb4   :  { %v70_v16 = vand.u32 2147483647, %v69_v15 }
  0xb6   :  { %v71_v17 = vadd.f32 1e-08, %v70_v16 }
  0xb8   :  { %102 = vlog2.f32 %v71_v17 }
  0xc5   :  { %v103_v18 = vpop.eup %102 }
  0xc6   :  { %v73_v19 = vmul.f32 0.6931472, %v103_v18 }
  0xc8   :  { %v74_v20 = vsub.f32 0.0, %v73_v19 }
  0xca   :  { %76 = vst.msk [vmem:[%s214_s6] sm:$0xff] %vm75_vm1, %v74_v20 }
  0xcb   :  { %146 = dma.done.wait [#allocation6], 128  }
  0xcc   :  { %147 = vsyncadd [#allocation6], 4294967168 }
  0xcd   :  { %94 = vsyncpa [#allocation5], 1 }
  0xce   :  { %95 = vsyncpa [#allocation6], 1 }

</bundles_post_ra>
